<compile_context>
chip_gen: v6e
topology: v6e:2x2x1
jax: 0.10.0
libtpu: 0.0.40
codegen_flags: <defaults>
</compile_context>

<pallas_src>
import jax
import jax.numpy as jnp
from jax.experimental import pallas as pl
from jax.experimental.pallas import tpu as pltpu

HIDDEN_SIZES = (256, 128)


def _round_up(x, m):
    return ((x + m - 1) // m) * m


def _make_actor_kernel(action_dim):
    A = action_dim

    def actor_kernel(x_ref, w1_ref, b1_ref, w2_ref, b2_ref, wht_ref, bht_ref, out_ref):
        # Layer 1: Linear + ReLU  (Dropout is identity at inference)
        x = x_ref[...].astype(jnp.bfloat16)                       # (bb, S)
        h1 = jnp.dot(x, w1_ref[...], preferred_element_type=jnp.float32) + b1_ref[...]
        h1 = jnp.maximum(h1, 0.0)                                  # (bb, 256) f32

        # Layer 2: Linear + ReLU  (Dropout is identity at inference)
        h2 = jnp.dot(h1.astype(jnp.bfloat16), w2_ref[...],
                     preferred_element_type=jnp.float32) + b2_ref[...]
        h2 = jnp.maximum(h2, 0.0)                                  # (bb, 128) f32

        # Fused transposed head: batch moves to the lane axis.
        #   z^T = W_head^T @ h2^T  -> (R, bb),  rows [0,A)=mu logits, [A,2A)=sigma logits
        # (transpose rides the otherwise-idle XLU; output slab is lane-dense.)
        z = jnp.dot(wht_ref[...], h2.astype(jnp.bfloat16).T,
                    preferred_element_type=jnp.float32) + bht_ref[...]

        mu = jnp.tanh(z)
        # single-exp numerically-stable softplus (+ 1e-5 as in the PyTorch module)
        sigma = jnp.maximum(z, 0.0) + jnp.log1p(jnp.exp(-jnp.abs(z))) + 1e-5

        row = jax.lax.broadcasted_iota(jnp.int32, z.shape, dimension=0)
        out_ref[...] = jnp.where(row < A, mu, sigma).astype(out_ref.dtype)

    return actor_kernel


def _choose_bb(B, block_b):
    """Batch tile: as large as possible, but >= 2 tiles when B is big enough so
    v7x's two TensorCores both get work.  Multiple of 128 whenever grid > 1
    (lane-dense output / sublane-aligned input)."""
    if B <= 256:
        return B                     # one tiny tile; splitting only adds step overhead
    return min(block_b, _round_up(pl.cdiv(B, 2), 128))


def actor_forward(state, kparams, action_dim, *, block_b=2048):
    """state: [B, state_dim] f32; kparams: packed kernel params (pack_actor_params).

    Returns (mu, sigma) each of shape [B, action_dim] (f32).
    Note: raising block_b past 2048 may need pltpu.CompilerParams(vmem_limit_bytes=...)
    on v5e (16 MiB default scoped VMEM)."""
    B, S = state.shape
    A = action_dim

    w1, b1 = kparams["w1"], kparams["b1"]
    w2, b2 = kparams["w2"], kparams["b2"]
    wht, bht = kparams["w_head_t"], kparams["b_head_t"]
    h1_dim, h2_dim = w1.shape[1], w2.shape[1]
    R = wht.shape[0]                 # padded head rows (>= 2*A, multiple of 8)

    bb = _choose_bb(B, block_b)
    grid = (pl.cdiv(B, bb),)

    flops = 2 * B * (S * h1_dim + h1_dim * h2_dim + h2_dim * R)
    transcendentals = B * R * 3      # tanh + exp + log1p per head element
    bytes_accessed = (
        B * S * 4
        + sum(int(a.size) * a.dtype.itemsize for a in (w1, b1, w2, b2, wht, bht))
        + R * B * 4
    )

    resident = lambda i: (0, 0)      # same block every step -> fetched once, stays in VMEM

    out = pl.pallas_call(
        _make_actor_kernel(A),
        out_shape=jax.ShapeDtypeStruct((R, B), jnp.float32),
        grid=grid,
        in_specs=[
            pl.BlockSpec((bb, S), lambda i: (i, 0)),
            pl.BlockSpec(w1.shape, resident),
            pl.BlockSpec(b1.shape, resident),
            pl.BlockSpec(w2.shape, resident),
            pl.BlockSpec(b2.shape, resident),
            pl.BlockSpec(wht.shape, resident),
            pl.BlockSpec(bht.shape, resident),
        ],
        out_specs=pl.BlockSpec((R, bb), lambda i: (0, i)),
        compiler_params=pltpu.CompilerParams(
            dimension_semantics=("parallel",)),
        cost_estimate=pl.CostEstimate(
            flops=flops,
            transcendentals=transcendentals,
            bytes_accessed=bytes_accessed),
    )(state, w1, b1, w2, b2, wht, bht)

    mu = out[:A, :].T                # (B, A)
    sigma = out[A:2 * A, :].T        # (B, A)
    return mu, sigma


def init_actor_params(key, state_dim, action_dim=1, hidden_sizes=HIDDEN_SIZES):
    """Kaiming-normal weights (fan_in), zero biases — matches Actor._init_weights.
    Weights stored transposed vs PyTorch: (in_features, out_features); f32 master copy."""
    h1, h2 = hidden_sizes
    k1, k2, k3, k4 = jax.random.split(key, 4)

    def kaiming(k, fan_in, fan_out):
        std = jnp.sqrt(2.0 / fan_in)
        return jax.random.normal(k, (fan_in, fan_out), dtype=jnp.float32) * std

    return {
        "w1": kaiming(k1, state_dim, h1), "b1": jnp.zeros((1, h1), jnp.float32),
        "w2": kaiming(k2, h1, h2),        "b2": jnp.zeros((1, h2), jnp.float32),
        "wmu": kaiming(k3, h2, action_dim), "bmu": jnp.zeros((1, action_dim), jnp.float32),
        "ws": kaiming(k4, h2, action_dim),  "bs": jnp.zeros((1, action_dim), jnp.float32),
    }


def pack_actor_params(p, action_dim):
    """Kernel-side params: bf16 weights; mu/sigma heads fused, transposed (rows = outputs)
    and zero-padded along sublanes to a multiple of 8."""
    A = action_dim
    h2 = p["w2"].shape[1]
    R = max(8, _round_up(2 * A, 8))
    w_head_t = jnp.zeros((R, h2), jnp.float32)
    w_head_t = w_head_t.at[:A, :].set(p["wmu"].T).at[A:2 * A, :].set(p["ws"].T)
    b_head_t = jnp.zeros((R, 1), jnp.float32)
    b_head_t = b_head_t.at[:A, 0].set(p["bmu"][0]).at[A:2 * A, 0].set(p["bs"][0])
    return {
        "w1": p["w1"].astype(jnp.bfloat16), "b1": p["b1"],
        "w2": p["w2"].astype(jnp.bfloat16), "b2": p["b2"],
        "w_head_t": w_head_t.astype(jnp.bfloat16), "b_head_t": b_head_t,
    }


def actor_forward_ref(state, p):
    """Pure-JAX reference (weights bf16-rounded to mirror kernel weight precision)."""
    q = lambda w: w.astype(jnp.bfloat16).astype(jnp.float32)
    h1 = jnp.maximum(state @ q(p["w1"]) + p["b1"], 0.0)
    h2 = jnp.maximum(h1 @ q(p["w2"]) + p["b2"], 0.0)
    mu = jnp.tanh(h2 @ q(p["wmu"]) + p["bmu"])
    sigma = jax.nn.softplus(h2 @ q(p["ws"]) + p["bs"]) + 1e-5
    return mu, sigma


if __name__ == "__main__":
    B, STATE_DIM, ACTION_DIM = 8, 32, 1

    key = jax.random.PRNGKey(0)
    kx, kp = jax.random.split(key)

    state = jax.random.normal(kx, (B, STATE_DIM), dtype=jnp.float32)
    params = init_actor_params(kp, STATE_DIM, ACTION_DIM, HIDDEN_SIZES)
    kparams = pack_actor_params(params, ACTION_DIM)

    mu, sigma = actor_forward(state, kparams, ACTION_DIM)
    jax.block_until_ready((mu, sigma))

    mu_ref, sigma_ref = actor_forward_ref(state, params)
    assert mu.shape == (B, ACTION_DIM) and sigma.shape == (B, ACTION_DIM)
    assert jnp.allclose(mu, mu_ref, atol=3e-2, rtol=3e-2)
    assert jnp.allclose(sigma, sigma_ref, atol=3e-2, rtol=3e-2)
    assert bool(jnp.all(sigma > 0.0))

    print("KERNEL_OK")
</pallas_src>

<mosaic_0001>
module attributes {stable_mosaic.version = 11 : i64} {
  func.func @actor_kernel(%arg0: i32, %arg1: memref<8x32xf32, #tpu.memory_space<vmem>>, %arg2: memref<32x256xbf16, #tpu.memory_space<vmem>>, %arg3: memref<1x256xf32, #tpu.memory_space<vmem>>, %arg4: memref<256x128xbf16, #tpu.memory_space<vmem>>, %arg5: memref<1x128xf32, #tpu.memory_space<vmem>>, %arg6: memref<8x128xbf16, #tpu.memory_space<vmem>>, %arg7: memref<8x1xf32, #tpu.memory_space<vmem>>, %arg8: memref<8x8xf32, #tpu.memory_space<vmem>>) attributes {dimension_semantics = [#tpu.dimension_semantics<parallel>], iteration_bounds = array<i64: 1>, scalar_prefetch = 0 : i64, scratch_operands = 0 : i64, tpu.core_type = #tpu.core_type<tc>, window_params = [{transform_indices = @transform_0, window_bounds = array<i64: 8, 32>}, {pipeline_mode = #tpu.pipeline_mode<synchronous>, transform_indices = @transform_1, window_bounds = array<i64: 32, 256>}, {pipeline_mode = #tpu.pipeline_mode<synchronous>, transform_indices = @transform_2, window_bounds = array<i64: 1, 256>}, {pipeline_mode = #tpu.pipeline_mode<synchronous>, transform_indices = @transform_3, window_bounds = array<i64: 256, 128>}, {pipeline_mode = #tpu.pipeline_mode<synchronous>, transform_indices = @transform_4, window_bounds = array<i64: 1, 128>}, {pipeline_mode = #tpu.pipeline_mode<synchronous>, transform_indices = @transform_5, window_bounds = array<i64: 8, 128>}, {pipeline_mode = #tpu.pipeline_mode<synchronous>, transform_indices = @transform_6, window_bounds = array<i64: 8, 1>}, {transform_indices = @transform_7, window_bounds = array<i64: 8, 8>}]} {
    %c0 = arith.constant 0 : index
    %c0_0 = arith.constant 0 : index
    %0 = vector.load %arg1[%c0, %c0_0] : memref<8x32xf32, #tpu.memory_space<vmem>>, vector<8x32xf32>
    %1 = arith.truncf %0 : vector<8x32xf32> to vector<8x32xbf16>
    %c0_1 = arith.constant 0 : index
    %c0_2 = arith.constant 0 : index
    %2 = vector.load %arg2[%c0_1, %c0_2] : memref<32x256xbf16, #tpu.memory_space<vmem>>, vector<32x256xbf16>
    %cst = arith.constant dense<0.000000e+00> : vector<8x256xf32>
    %3 = tpu.matmul %1, %2, %cst {dimension_numbers = #tpu.dot_dimension_numbers<[1], [0], [0], [1], [0, 0, 1, 1], [], []>} : vector<8x32xbf16>, vector<32x256xbf16>, vector<8x256xf32> -> vector<8x256xf32>
    %c0_3 = arith.constant 0 : index
    %c0_4 = arith.constant 0 : index
    %4 = vector.load %arg3[%c0_3, %c0_4] : memref<1x256xf32, #tpu.memory_space<vmem>>, vector<1x256xf32>
    %5 = vector.broadcast %4 : vector<1x256xf32> to vector<8x256xf32>
    %6 = arith.addf %3, %5 : vector<8x256xf32>
    %cst_5 = arith.constant 0.000000e+00 : f32
    %7 = vector.broadcast %cst_5 : f32 to vector<8x256xf32>
    %8 = arith.maximumf %6, %7 : vector<8x256xf32>
    %9 = arith.truncf %8 : vector<8x256xf32> to vector<8x256xbf16>
    %c0_6 = arith.constant 0 : index
    %c0_7 = arith.constant 0 : index
    %10 = vector.load %arg4[%c0_6, %c0_7] : memref<256x128xbf16, #tpu.memory_space<vmem>>, vector<256x128xbf16>
    %cst_8 = arith.constant dense<0.000000e+00> : vector<8x128xf32>
    %11 = tpu.matmul %9, %10, %cst_8 {dimension_numbers = #tpu.dot_dimension_numbers<[1], [0], [0], [1], [0, 0, 1, 1], [], []>} : vector<8x256xbf16>, vector<256x128xbf16>, vector<8x128xf32> -> vector<8x128xf32>
    %c0_9 = arith.constant 0 : index
    %c0_10 = arith.constant 0 : index
    %12 = vector.load %arg5[%c0_9, %c0_10] : memref<1x128xf32, #tpu.memory_space<vmem>>, vector<1x128xf32>
    %13 = vector.broadcast %12 : vector<1x128xf32> to vector<8x128xf32>
    %14 = arith.addf %11, %13 : vector<8x128xf32>
    %cst_11 = arith.constant 0.000000e+00 : f32
    %15 = vector.broadcast %cst_11 : f32 to vector<8x128xf32>
    %16 = arith.maximumf %14, %15 : vector<8x128xf32>
    %c0_12 = arith.constant 0 : index
    %c0_13 = arith.constant 0 : index
    %17 = vector.load %arg6[%c0_12, %c0_13] : memref<8x128xbf16, #tpu.memory_space<vmem>>, vector<8x128xbf16>
    %18 = arith.truncf %16 : vector<8x128xf32> to vector<8x128xbf16>
    %19 = tpu.transpose %18, [1, 0] : vector<8x128xbf16> -> vector<128x8xbf16>
    %cst_14 = arith.constant dense<0.000000e+00> : vector<8x8xf32>
    %20 = tpu.matmul %17, %19, %cst_14 {dimension_numbers = #tpu.dot_dimension_numbers<[1], [0], [0], [1], [0, 0, 1, 1], [], []>} : vector<8x128xbf16>, vector<128x8xbf16>, vector<8x8xf32> -> vector<8x8xf32>
    %c0_15 = arith.constant 0 : index
    %c0_16 = arith.constant 0 : index
    %21 = vector.load %arg7[%c0_15, %c0_16] : memref<8x1xf32, #tpu.memory_space<vmem>>, vector<8x1xf32>
    %22 = vector.broadcast %21 : vector<8x1xf32> to vector<8x8xf32>
    %23 = arith.addf %20, %22 : vector<8x8xf32>
    %24 = math.tanh %23 : vector<8x8xf32>
    %cst_17 = arith.constant 0.000000e+00 : f32
    %25 = vector.broadcast %cst_17 : f32 to vector<8x8xf32>
    %26 = arith.maximumf %23, %25 : vector<8x8xf32>
    %27 = math.absf %23 : vector<8x8xf32>
    %cst_18 = arith.constant 0.000000e+00 : f32
    %28 = vector.broadcast %cst_18 : f32 to vector<8x8xf32>
    %29 = arith.subf %28, %27 : vector<8x8xf32>
    %30 = math.exp %29 : vector<8x8xf32>
    %31 = math.log1p %30 : vector<8x8xf32>
    %32 = arith.addf %26, %31 : vector<8x8xf32>
    %cst_19 = arith.constant 9.99999974E-6 : f32
    %33 = vector.broadcast %cst_19 : f32 to vector<8x8xf32>
    %34 = arith.addf %32, %33 : vector<8x8xf32>
    %35 = tpu.iota {dimensions = array<i32: 0>} : vector<8x8xi32>
    %c1_i32 = arith.constant 1 : i32
    %36 = vector.broadcast %c1_i32 : i32 to vector<8x8xi32>
    %37 = arith.cmpi slt, %35, %36 : vector<8x8xi32>
    %38 = arith.select %37, %24, %34 : vector<8x8xi1>, vector<8x8xf32>
    %c0_20 = arith.constant 0 : index
    %c0_21 = arith.constant 0 : index
    %39 = vector.load %arg8[%c0_20, %c0_21] : memref<8x8xf32, #tpu.memory_space<vmem>>, vector<8x8xf32>
    tpu.vector_store %arg8[%c0_20, %c0_21], %38 {strides = array<i32>} : memref<8x8xf32, #tpu.memory_space<vmem>>, vector<8x8xf32>,
    return
  }
  func.func @transform_0(%arg0: i32) -> (i32, i32) {
    %c0_i32 = arith.constant 0 : i32
    %c0_i32_0 = arith.constant 0 : i32
    return %arg0, %c0_i32 : i32, i32
  }
  func.func @transform_1(%arg0: i32) -> (i32, i32) {
    %c0_i32 = arith.constant 0 : i32
    %c0_i32_0 = arith.constant 0 : i32
    %c0_i32_1 = arith.constant 0 : i32
    return %c0_i32, %c0_i32_0 : i32, i32
  }
  func.func @transform_2(%arg0: i32) -> (i32, i32) {
    %c0_i32 = arith.constant 0 : i32
    %c0_i32_0 = arith.constant 0 : i32
    %c0_i32_1 = arith.constant 0 : i32
    return %c0_i32, %c0_i32_0 : i32, i32
  }
  func.func @transform_3(%arg0: i32) -> (i32, i32) {
    %c0_i32 = arith.constant 0 : i32
    %c0_i32_0 = arith.constant 0 : i32
    %c0_i32_1 = arith.constant 0 : i32
    return %c0_i32, %c0_i32_0 : i32, i32
  }
  func.func @transform_4(%arg0: i32) -> (i32, i32) {
    %c0_i32 = arith.constant 0 : i32
    %c0_i32_0 = arith.constant 0 : i32
    %c0_i32_1 = arith.constant 0 : i32
    return %c0_i32, %c0_i32_0 : i32, i32
  }
  func.func @transform_5(%arg0: i32) -> (i32, i32) {
    %c0_i32 = arith.constant 0 : i32
    %c0_i32_0 = arith.constant 0 : i32
    %c0_i32_1 = arith.constant 0 : i32
    return %c0_i32, %c0_i32_0 : i32, i32
  }
  func.func @transform_6(%arg0: i32) -> (i32, i32) {
    %c0_i32 = arith.constant 0 : i32
    %c0_i32_0 = arith.constant 0 : i32
    %c0_i32_1 = arith.constant 0 : i32
    return %c0_i32, %c0_i32_0 : i32, i32
  }
  func.func @transform_7(%arg0: i32) -> (i32, i32) {
    %c0_i32 = arith.constant 0 : i32
    %c0_i32_0 = arith.constant 0 : i32
    return %c0_i32, %arg0 : i32, i32
  }
}

</mosaic_0001>

<bundles_post_ra>
// kernel: tpu_custom_call.1
= control target key start
LH: loop header
LB: loop body
LE: loop exit
PB: predicated region body
PF: predicated region fallthrough
CT: control target
= control target key end

     0   :  { %12 = vsyncpa [#allocation3], 0  ;;  %s675_s0 = inlined_call_operand.vmem [shape: f32[8,32], index: 0, kind: input, shape index: {}]   ;;  %s676_s1 = inlined_call_operand.hbm [shape: bf16[32,256], index: 1, kind: input, shape index: {}]   ;;  %s677_s2 = inlined_call_operand.hbm [shape: f32[1,256], index: 2, kind: input, shape index: {}]   ;;  %s678_s3 = inlined_call_operand.hbm [shape: bf16[256,128], index: 3, kind: input, shape index: {}]   ;;  %s679_s4 = inlined_call_operand.vmem [shape: f32[1,128], index: 4, kind: input, shape index: {}]   ;;  %s680_s5 = inlined_call_operand.vmem [shape: bf16[8,128], index: 5, kind: input, shape index: {}]   ;;  %s681_s6 = inlined_call_operand.vmem [shape: f32[8,1], index: 6, kind: input, shape index: {}]   ;;  %s682_s7 = inlined_call_operand.hbm [shape: f32[8,8], index: 7, kind: output, shape index: {}]  }
   0x1   :  { %13 = vsyncpa [#allocation6], 0 }
   0x2   :  { %14 = vsyncpa [#allocation4], 0  ;;  %s595_s24 = smov [#allocation5]   ;;  %s596_s26 = smov [#allocation2]  }
   0x3   :  { %s35_s25 = sshll.u32 %s595_s24, 4  ;;  %s22_s27 = sshll.u32 %s596_s26, 4  ;;  %s36_s25 = int_to_ptr.vmem [resolvable:$true] %s35_s25  ;;  %s23_s27 = int_to_ptr.vmem [resolvable:$true] %s22_s27 }
   0x4   :  { %s517_s28 = scalar_lea.vmem %s36_s25, 32  ;;  %p522_p1 = scmp.lt.s32.totalorder %s36_s25, %s36_s25 }
   0x5   :  { %p518_p0 = scmp.ne.s32.totalorder %s36_s25, %s517_s28  ;;  %p523_p2 = scmp.lt.s32.totalorder %s517_s28, %s517_s28 }
   0x7   :  { %p524_p3 = por %p523_p2, %p522_p1 }
   0x9   :  { %p525_p4 = pnand %p524_p3, %p518_p0 }
   0xb   :  { %528 = shalt.err (!%p525_p4)
}
   0xc   :  { %38 = dma.hbm_to_vmem [thread:$0]  %s677_s2, 32, %s36_s25, [#allocation6]  }
   0xd   :  { %s537_s8 = scalar_lea.vmem %s23_s27, 512  ;;  %p542_p6 = scmp.lt.s32.totalorder %s23_s27, %s23_s27 }
   0xe   :  { %p538_p5 = scmp.ne.s32.totalorder %s23_s27, %s537_s8  ;;  %p543_p7 = scmp.lt.s32.totalorder %s537_s8, %s537_s8 }
  0x10   :  { %p544_p8 = por %p543_p7, %p542_p6 }
  0x12   :  { %p545_p9 = pnand %p544_p8, %p538_p5 }
  0x14   :  { %548 = shalt.err (!%p545_p9)
}
  0x15   :  { %s597_s9 = smov 128   ;;  %s598_s10 = smov 8  }
  0x16   :  { %28 = dma.hbm_to_vmem [thread:$0]  %s676_s1, 512, %s23_s27, [#allocation3], %s597_s9, %s597_s9, %s598_s10  }
  0x17   :  { %s599_s13 = smov [#allocation7]  }
  0x18   :  { %s44_s14 = sshll.u32 %s599_s13, 4  ;;  %s45_s14 = int_to_ptr.vmem [resolvable:$true] %s44_s14 }
  0x19   :  { %s557_s15 = scalar_lea.vmem %s45_s14, 2048  ;;  %p562_p11 = scmp.lt.s32.totalorder %s45_s14, %s45_s14 }
  0x1a   :  { %p558_p10 = scmp.ne.s32.totalorder %s45_s14, %s557_s15  ;;  %p563_p12 = scmp.lt.s32.totalorder %s557_s15, %s557_s15 }
  0x1c   :  { %p564_p13 = por %p563_p12, %p562_p11 }
  0x1e   :  { %p565_p0 = pnand %p564_p13, %p558_p10 }
  0x20   :  { %568 = shalt.err (!%p565_p0)
}
  0x21   :  { %s600_s2 = smov 64   ;;  %s601_s16 = smov 4  }
  0x22   :  { %50 = dma.hbm_to_vmem [thread:$0]  %s678_s3, 2048, %s45_s14, [#allocation6], %s600_s2, %s600_s2, %s601_s16  }
  0x23   :  { %589 = dma.done.wait [#allocation3], 512  }
  0x24   :  { %590 = vsyncadd [#allocation3], 4294966784 }
  0x25   :  { %591 = dma.done.wait [#allocation6], 2080  }
  0x26   :  { %592 = vsyncadd [#allocation6], 4294965216  ;;  %v602_v0 = vmov 0   ;;  %v481_v1 = vld [vmem:[#allocation2 + $0x14] ss:$8 sps:$4 sm:$0xff]   ;;  %v67_v5 = vld [vmem:[%s675_s0] sm:$0xff]  ;;  %v75_v23 = vlaneseq }
  0x27   :  { %141 = vmatprep.mubr.bf16.mxu0 %v602_v0  ;;  %480 = vset.pattern.permute.xlu0 %v602_v0  ;;  %v483_v2 = vld [vmem:[#allocation2 + $0x10] ss:$8 sps:$4 sm:$0xff]   ;;  %v484_v3 = vld [vmem:[#allocation2 + $0x4] ss:$8 sps:$4 sm:$0xff]   ;;  %v486_v4 = vld [vmem:[#allocation2] ss:$8 sps:$4 sm:$0xff]   ;;  %v68_v9 = vpack.c.bf16 %v67_v5, %v67_v5 }
  0x28   :  { %121 = vmatprep.subr.bf16.mxu0 %v481_v1  ;;  %v487_v6 = vld [vmem:[#allocation7 + $0x78] sm:$0xff]   ;;  %v489_v8 = vld [vmem:[#allocation7 + $0x70] sm:$0xff]   ;;  %vm105_vm0 = vcmask 261120   ;;  %v491_v11 = vld [vmem:[#allocation7 + $0x68] sm:$0xff]   ;;  %v658_v24 = vshrl.u32 %v75_v23, 7  ;;  %v603_v40 = vmov 0.0  }
  0x29   :  { %122 = vmatpush1.bf16.msra.mxu0 %v483_v2  ;;  %v488_v7 = vld [vmem:[#allocation7 + $0x38] sm:$0xff]   ;;  %439 = vmatprep.subr.bf16.mxu1 %v487_v6  ;;  %v490_v10 = vld [vmem:[#allocation7 + $0x30] sm:$0xff]   ;;  %v492_v12 = vld [vmem:[#allocation7 + $0x28] sm:$0xff]   ;;  %vm604_vm1 = vmmov 0   ;;  %vm399_vm4 = vcmask 64512  }
  0x2a   :  { %123 = vmatprep.subr.bf16.mxu0 %v484_v3  ;;  %440 = vmatpush3.bf16.msra.mxu1 %v488_v7  ;;  %v493_v13 = vld [vmem:[#allocation7 + $0x60] sm:$0xff]   ;;  %v495_v15 = vld [vmem:[#allocation7 + $0x58] sm:$0xff]   ;;  %v497_v17 = vld [vmem:[#allocation7 + $0x50] sm:$0xff]   ;;  %v77_v25 = vsub.s32 0, %v658_v24  ;;  %v81_v27 = vsub.s32 1, %v658_v24  ;;  %vm397_vm3 = vcmp.lt.s32.totalorder %v658_v24, 1 }
  0x2b   :  { %441 = vmatprep.subr.bf16.mxu1 %v489_v8  ;;  %v494_v14 = vld [vmem:[#allocation7 + $0x20] sm:$0xff]   ;;  %v496_v16 = vld [vmem:[#allocation7 + $0x18] sm:$0xff]   ;;  %v498_v18 = vld [vmem:[#allocation7 + $0x10] sm:$0xff]  }
  0x2c   :  { %v499_v19 = vld [vmem:[#allocation7 + $0x48] sm:$0xff]   ;;  %v501_v21 = vld [vmem:[#allocation7 + $0x40] sm:$0xff]   ;;  %v73_v26 = vld [vmem:[#allocation5] sm:$0x3] }
  0x2d   :  { %124 = vmatpush1.bf16.msra.mxu0 %v486_v4  ;;  %v500_v20 = vld [vmem:[#allocation7 + $0x8] sm:$0xff]   ;;  %v502_v22 = vld [vmem:[#allocation7] sm:$0xff]   ;;  %v78_v28 = vrot.slane %v73_v26, %v77_v25  ;;  %v82_v29 = vrot.slane %v73_v26, %v81_v27  ;;  %v422_v43 = vld [vmem:[%s679_s4] ss:$0 sm:$0xff]  ;;  %s605_s4 = smov [#allocation8]  }
  0x2e   :  { %442 = vmatpush3.bf16.msra.mxu1 %v490_v10  ;;  %463 = vmatprep.subr.bf16.mxu0 %v603_v40  ;;  %v332_v41 = vld [vmem:[%s681_s6] sm:$0xff] }
  0x2f   :  { %443 = vmatprep.subr.bf16.mxu1 %v491_v11  ;;  %335 = vperm.xlu0 %480, %v332_v41   ;;  %v330_v51 = vld [vmem:[%s680_s5] sm:$0xf]  ;;  %s407_s5 = sshll.u32 %s605_s4, 4  ;;  %s408_s5 = int_to_ptr.vmem [resolvable:$true] %s407_s5 }
  0x30   :  { %421 = vmatmul.mubr.msk.bf16.vlgmr.msra.gmra.mxu0 %vm105_vm0, %v68_v9  ;;  %s569_s6 = scalar_lea.vmem %s408_s5, 128  ;;  %p574_p2 = scmp.lt.s32.totalorder %s408_s5, %s408_s5 }
  0x31   :  { %465 = vmatprep.mubr.msk.bf16.mxu0 %vm604_vm1, %v603_v40  ;;  %p570_p1 = scmp.ne.s32.totalorder %s408_s5, %s569_s6  ;;  %p575_p3 = scmp.lt.s32.totalorder %s569_s6, %s569_s6 }
  0x32   :  { %444 = vmatpush3.bf16.msra.mxu1 %v492_v12 }
  0x33   :  { %445 = vmatprep.subr.bf16.mxu1 %v493_v13  ;;  %p576_p4 = por %p575_p3, %p574_p2 }
  0x35   :  { %p577_p5 = pnand %p576_p4, %p570_p1 }
  0x36   :  { %446 = vmatpush3.bf16.msra.mxu1 %v494_v14 }
  0x37   :  { %447 = vmatprep.subr.bf16.mxu1 %v495_v15 }
  0x3a   :  { %448 = vmatpush3.bf16.msra.mxu1 %v496_v16 }
  0x3b   :  { %449 = vmatprep.subr.bf16.mxu1 %v497_v17 }
  0x3e   :  { %450 = vmatpush3.bf16.msra.mxu1 %v498_v18 }
  0x3f   :  { %451 = vmatprep.subr.bf16.mxu1 %v499_v19 }
  0x42   :  { %452 = vmatpush3.bf16.msra.mxu1 %v500_v20 }
  0x43   :  { %453 = vmatprep.subr.bf16.mxu1 %v501_v21 }
  0x46   :  { %454 = vmatpush3.bf16.msra.mxu1 %v502_v22 }
  0xaa   :  { %v336_v52 = vpop.permute.xlu0 %335 }
  0xf0   :  { %v143_v30 = vpop.f32.mrf.mxu0 }
  0xf1   :  { %v144_v31 = vadd.f32 %v143_v30, %v78_v28 }
  0xf2   :  { %v145_v32 = vpop.f32.mrf.mxu0 }
  0xf3   :  { %v146_v33 = vadd.f32 %v145_v32, %v82_v29  ;;  %v150_v34 = vmax.f32 %v144_v31, 0.0 }
  0xf4   :  { %v147_v35 = vpop.f32.mrf.mxu0 }
  0xf5   :  { %v151_v36 = vmax.f32 %v146_v33, 0.0  ;;  %v152_v39 = vpack.c.bf16 %v150_v34, %v150_v34 }
  0xf6   :  { %v148_v37 = vpop.f32.mrf.mxu0 }
  0xf7   :  { %v153_v38 = vpack.c.bf16 %v151_v36, %v151_v36 }
  0xf9   :  { %321 = vmatprep.mubr.bf16.mxu1 %v153_v38 }
  0xfa   :  { %322 = vmatmul.mubr.bf16.vlgmr.msra.gmra.mxu1 %v152_v39 }
 0x1ba   :  { %v455_v42 = vpop.f32.mrf.mxu1 }
 0x1bc   :  { %v456_v44 = vpop.f32.mrf.mxu1 }
 0x1bd   :  { %v457_v45 = vadd.f32 %v456_v44, %v455_v42 }
 0x1be   :  { %v458_v46 = vpop.f32.mrf.mxu1 }
 0x1bf   :  { %v324_v47 = vadd.f32 %v457_v45, %v422_v43 }
 0x1c0   :  { %v459_v48 = vpop.f32.mrf.mxu1 }
 0x1c1   :  { %v329_v49 = vmax.f32 %v324_v47, 0.0 }
 0x1c3   :  { %v331_v50 = vpack.c.bf16 %v329_v49, %v329_v49 }
 0x1c5   :  { %464 = vmatpush3.bf16.xpose.msra.mxu0 %v331_v50 }
 0x1cc   :  { %466 = vmatmul.mubr.bf16.vlgmr.msra.gmra.mxu0 %v330_v51 }
 0x28c   :  { %v372_v53 = vpop.f32.mrf.mxu0 }
 0x28d   :  { %v373_v54 = vadd.f32 %v372_v53, %v336_v52 }
 0x28e   :  { %v467_v55 = vpop.f32.mrf.mxu0 }
 0x28f   :  { %v380_v56 = vand.u32 2147483647, %v373_v54  ;;  %v379_v5 = vmax.f32 %v373_v54, 0.0 }
 0x290   :  { %v375_v57 = vpop.f32.mrf.mxu0 }
 0x291   :  { %v381_v58 = vsub.f32 0.0, %v380_v56 }
 0x292   :  { %v468_v59 = vpop.f32.mrf.mxu0 }
 0x293   :  { %v382_v60 = vmul.f32 1.442695, %v381_v58 }
 0x295   :  { %503 = vpow2.f32 %v382_v60 }
 0x2a2   :  { %v504_v61 = vpop.eup %503 }
 0x2a3   :  { %v384_v62 = vadd.f32 1.0, %v504_v61  ;;  %v387_v63 = vmul.f32 -0.5, %v504_v61  ;;  %v390_v1 = vand.u32 2147483647, %v504_v61 }
 0x2a5   :  { %505 = vlog2.f32 %v384_v62  ;;  %v388_v0 = vadd.f32 1.0, %v387_v63  ;;  %vm391_vm2 = vcmp.lt.f32.partialorder %v390_v1, 0.0004427343 }
 0x2a6   :  { %507 = vtanh.f32 %v373_v54 }
 0x2a7   :  { %v389_v4 = vmul.f32 %v504_v61, %v388_v0 }
 0x2b2   :  { %v506_v2 = vpop.eup %505 }
 0x2b3   :  { %v386_v3 = vmul.f32 0.6931472, %v506_v2  ;;  %v508_v9 = vpop.eup %507 }
 0x2b5   :  { %v392_v6 = vsel %vm391_vm2, %v389_v4, %v386_v3 }
 0x2b6   :  { %v393_v7 = vadd.f32 %v392_v6, %v379_v5 }
 0x2b8   :  { %v394_v8 = vadd.f32 1e-05, %v393_v7 }
 0x2ba   :  { %v398_v10 = vsel %vm397_vm3, %v508_v9, %v394_v8 }
 0x2bb   :  { %400 = vst.msk [vmem:[#allocation8] sm:$0xff] %vm399_vm4, %v398_v10 }
 0x2bc   :  { %580 = shalt.err (!%p577_p5)
}
 0x2bd   :  { %410 = dma.vmem_to_hbm [thread:$0]  %s408_s5, 128, %s682_s7, [#allocation4]  }
 0x2be   :  { %593 = dma.done.wait [#allocation4], 128  }
 0x2bf   :  { %594 = vsyncadd [#allocation4], 4294967168 }
 0x2c0   :  { %414 = vsyncpa [#allocation3], 1 }
 0x2c1   :  { %415 = vsyncpa [#allocation6], 1 }
 0x2c2   :  { %416 = vsyncpa [#allocation4], 1 }

</bundles_post_ra>
